<compile_context>
chip_gen: v5e
topology: v5e:2x2
jax: 0.10.0
libtpu: 0.0.40
codegen_flags: <defaults>
</compile_context>

<pallas_src>
import numpy as np
import jax
import jax.numpy as jnp
from jax.experimental import pallas as pl
from jax.experimental.pallas import tpu as pltpu

LRELU_SLOPE = 0.01   # nn.LeakyReLU default negative_slope
BN_EPS = 1e-5        # nn.BatchNorm2d default eps


# ----------------------- offline constant-matrix packing -----------------------

def band_conv_blocks(w_folded, W):
    """w_folded: (Cout, Cin, 3, 3) with eval-BatchNorm already folded in.

    Returns M of shape (3, W*Cin, W*Cout): per-H-tap banded weight blocks so that
    y = sum_kh shift_kh(a) @ M[kh] is the 3x3 conv.  Activation lanes are (w, c) with c
    fastest; zero padding along W is implicit in the band structure."""
    Cout, Cin, KH, KW = w_folded.shape
    M = np.zeros((KH, W * Cin, W * Cout), np.float32)
    for kh in range(KH):
        for kw in range(KW):
            for j in range(W):
                js = j + kw - 1                       # source column (padding=1)
                if 0 <= js < W:
                    for ci in range(Cin):
                        M[kh, js * Cin + ci, j * Cout:(j + 1) * Cout] = w_folded[:, ci, kh, kw]
    return M


def w_pool_select(W, C):
    """(W*C, (W//2)*C) 0/1 matrix keeping the even-w lane blocks after the lane-shift max."""
    Wo = W // 2
    T = np.zeros((W * C, Wo * C), np.float32)
    for jo in range(Wo):
        for c in range(C):
            T[(2 * jo) * C + c, jo * C + c] = 1.0
    return T


def permute_fc_weight(fc_w, C, H, W):
    """torch Linear weight (O, C*H*W) with NCHW flatten ordering (c,i,j) -> stacked
    (H, W*C, O) blocks matching the kernel's per-height rows with lanes (j, c), c fastest."""
    O = fc_w.shape[0]
    Wk = np.zeros((H, W * C, O), np.float32)
    for c in range(C):
        for i in range(H):
            for j in range(W):
                Wk[i, j * C + c, :] = fc_w[:, c * H * W + i * W + j]
    return Wk


def pack_kernel_operands(convs, fc_w, fc_b, B, input_hw):
    """Fold eval-mode BatchNorm (gamma=1, beta=0, mean=0, var=1) into conv weights/biases
    and build the (small, non-quadratic) constant matrices the fused kernel needs."""
    bn_scale = 1.0 / np.sqrt(1.0 + BN_EPS)
    H, W = input_hw
    layers = []
    prev = 1
    for p in convs:
        w = np.asarray(p["w"], np.float32) * bn_scale          # (Cout, Cin, 3, 3) folded
        b = np.asarray(p["b"], np.float32) * bn_scale          # (Cout,) folded
        cout = w.shape[0]
        assert H % 2 == 0 and W % 2 == 0, "odd spatial sizes (ceil_mode pad) unsupported"
        layers.append(dict(
            m=band_conv_blocks(w, W),                          # (3, W*Cin, W*Cout)
            bias=np.tile(b, W)[None, :].astype(np.float32),    # (1, W*Cout), cout fastest
            t=w_pool_select(W, cout),                          # (W*Cout, Wo*Cout)
            dims=(B, H, W, prev, cout),
        ))
        prev = cout
        H, W = H // 2, W // 2
    wk = permute_fc_weight(np.asarray(fc_w, np.float32), prev, H, W)  # (H2, W2*C2, O)
    bfc = np.asarray(fc_b, np.float32)[None, :]
    return layers, wk, bfc, (H, W, prev)


# --------------------------- fused Pallas forward ------------------------------

def build_fused_forward(B, input_hw, convs, fc_w, fc_b, out_features=2):
    layers, wk, bfc, (H2, W2, C2) = pack_kernel_operands(convs, fc_w, fc_b, B, input_hw)
    n_layers = len(layers)
    H0, W0 = input_hw
    layer_dims = [lyr["dims"] for lyr in layers]

    def kernel(*refs):
        x_ref = refs[0]
        layer_refs = refs[1:1 + 3 * n_layers]
        wk_ref = refs[1 + 3 * n_layers]
        bfc_ref = refs[2 + 3 * n_layers]
        out_ref = refs[3 + 3 * n_layers]
        vw_refs = refs[4 + 3 * n_layers:4 + 4 * n_layers]
        af_ref = refs[4 + 4 * n_layers]

        def conv_bn_lrelu_pool(a, m_ref, b_ref, t_ref, vw_ref, dims):
            Bb, H, W, Cin, Cout = dims
            BH = Bb * H
            # H-direction 3x3 taps: sublane rolls (XLU) + exact iota boundary masks
            # (zero-pad rows where h==0 / h==H-1, also kills cross-batch wrap).
            h_idx = jax.lax.broadcasted_iota(jnp.int32, (BH, 1), 0) % H
            a_up = jnp.where(h_idx > 0, pltpu.roll(a, shift=1, axis=0), 0.0)          # src h-1
            a_dn = jnp.where(h_idx < H - 1, pltpu.roll(a, shift=BH - 1, axis=0), 0.0)  # src h+1
            # 3x3 conv + folded BatchNorm: per-tap accumulate against lane-dense banded
            # (W*Cin, W*Cout) blocks; bf16 MXU operands, f32 accumulation.
            y = (jnp.dot(a_up.astype(jnp.bfloat16), m_ref[0], preferred_element_type=jnp.float32)
                 + jnp.dot(a.astype(jnp.bfloat16), m_ref[1], preferred_element_type=jnp.float32)
                 + jnp.dot(a_dn.astype(jnp.bfloat16), m_ref[2], preferred_element_type=jnp.float32)
                 + b_ref[...])
            y = jnp.where(y >= 0.0, y, LRELU_SLOPE * y)          # LeakyReLU (f32, VPU)
            # 2x2 max pool, W direction: lane roll by -Cout (XLU) + VPU max, then ONE
            # 0/1 compaction matmul keeping the even-w lane blocks.
            L = W * Cout
            ymax = jnp.maximum(y, pltpu.roll(y, shift=L - Cout, axis=1))
            vw = jnp.dot(ymax.astype(jnp.bfloat16), t_ref[...],
                         preferred_element_type=jnp.float32)     # (B*H, Wo*Cout)
            # 2x2 max pool, H direction: strided even/odd row reads + VPU max (exact).
            vw_ref[...] = vw
            BHo = BH // 2
            return jnp.maximum(vw_ref[pl.ds(0, BHo, stride=2), :],
                               vw_ref[pl.ds(1, BHo, stride=2), :])

        a = x_ref[...]                                            # (B*H0, W0*Cin), Cin=1
        for l in range(n_layers):
            m_ref, b_ref, t_ref = layer_refs[3 * l:3 * l + 3]
            a = conv_bn_lrelu_pool(a, m_ref, b_ref, t_ref, vw_refs[l], layer_dims[l])

        # Flatten (NCHW ordering pre-baked into wk) + Linear; Dropout is identity (eval).
        # Per-height strided row gather + small matmul accumulate: no lane concats.
        af_ref[...] = a                                           # (B*H2, W2*C2)
        acc = jnp.zeros((B, out_features), jnp.float32) + bfc_ref[...]
        for i in range(H2):
            rows_i = af_ref[pl.ds(i, B, stride=H2), :]            # rows (b, i) for all b
            acc = acc + jnp.dot(rows_i.astype(jnp.bfloat16), wk_ref[i],
                                preferred_element_type=jnp.float32)
        out_ref[...] = acc

    # Constant operands: bf16 for MXU operands (0/1 selection matrices are exact in bf16),
    # f32 for the bias rows that are added on the VPU.
    operands = []
    for lyr in layers:
        operands += [jnp.asarray(lyr["m"], jnp.bfloat16),
                     jnp.asarray(lyr["bias"], jnp.float32),
                     jnp.asarray(lyr["t"], jnp.bfloat16)]
    operands += [jnp.asarray(wk, jnp.bfloat16), jnp.asarray(bfc, jnp.float32)]

    scratch = [pltpu.VMEM((d[0] * d[1], (d[2] // 2) * d[4]), jnp.float32) for d in layer_dims]
    scratch += [pltpu.VMEM((B * H2, W2 * C2), jnp.float32)]

    def full_spec(shape):
        nd = len(shape)
        return pl.BlockSpec(shape, lambda i, _nd=nd: (0,) * _nd)

    def forward(x_nchw):
        # NCHW input with Cin=1 -> (B*H0, W0); rows=(b,h), lanes=w.  Pure reshape.
        x2d = x_nchw.reshape(B * H0, W0)
        args = [x2d] + operands
        return pl.pallas_call(
            kernel,
            grid=(1,),
            in_specs=[full_spec(a.shape) for a in args],
            out_specs=full_spec((B, out_features)),
            out_shape=jax.ShapeDtypeStruct((B, out_features), jnp.float32),
            scratch_shapes=scratch,
            compiler_params=pltpu.CompilerParams(dimension_semantics=("arbitrary",)),
        )(*args)

    return forward


# ------------------------------ parameter init ---------------------------------

def xavier_uniform(key, shape, fan_in, fan_out):
    bound = float(np.sqrt(6.0 / (fan_in + fan_out)))
    return jax.random.uniform(key, shape, jnp.float32, -bound, bound)


def init_torch_params(key, layer_number, inplanes, input_hw, out_features=2):
    """PyTorch-layout parameters: conv weights (OIHW) + biases, fc weight/bias."""
    chanls = [inplanes * 2 ** i for i in range(layer_number)]
    convs = []
    prev = 1
    for cout in chanls:
        key, kw_, kb_ = jax.random.split(key, 3)
        fan_in, fan_out = prev * 9, cout * 9
        w = xavier_uniform(kw_, (cout, prev, 3, 3), fan_in, fan_out)     # xavier
        bound = 1.0 / float(np.sqrt(fan_in))
        b = jax.random.uniform(kb_, (cout,), jnp.float32, -bound, bound) # torch default bias
        convs.append(dict(w=w, b=b))
        prev = cout
    H, W = input_hw
    fc_in = prev * (H // 2 ** layer_number) * (W // 2 ** layer_number)
    key, kfw = jax.random.split(key)
    fc_w = xavier_uniform(kfw, (out_features, fc_in), fc_in, out_features)
    fc_b = jnp.full((out_features,), 0.01, jnp.float32)                  # bias.data.fill_(0.01)
    return key, convs, fc_w, fc_b


# ------------------------- pure-XLA reference (check) ---------------------------

def reference_forward(x_nchw, convs, fc_w, fc_b):
    bn_scale = 1.0 / np.sqrt(1.0 + BN_EPS)
    x = x_nchw
    for p in convs:
        x = jax.lax.conv_general_dilated(
            x, p["w"], window_strides=(1, 1), padding=((1, 1), (1, 1)),
            dimension_numbers=("NCHW", "OIHW", "NCHW"),
            precision=jax.lax.Precision.HIGHEST)
        x = (x + p["b"][None, :, None, None]) * bn_scale        # BatchNorm eval (default stats)
        x = jnp.where(x >= 0.0, x, LRELU_SLOPE * x)             # LeakyReLU
        x = jax.lax.reduce_window(x, -jnp.inf, jax.lax.max,
                                  (1, 1, 2, 2), (1, 1, 2, 2), "VALID")
    flat = x.reshape(x.shape[0], -1)                            # NCHW flatten; Dropout=id (eval)
    return jnp.dot(flat, fc_w.T, precision=jax.lax.Precision.HIGHEST) + fc_b[None, :]


# ------------------------------------ main --------------------------------------

if __name__ == "__main__":
    layer_number = 2
    input_size = (16, 16)
    inplanes = 4                 # cf.TRUE_DATA_CNN_INPLANES (small synthetic value)
    batch = 2

    key = jax.random.PRNGKey(0)
    key, convs, fc_w, fc_b = init_torch_params(key, layer_number, inplanes, input_size)

    forward = build_fused_forward(batch, input_size, convs, fc_w, fc_b)

    key, kx = jax.random.split(key)
    # PyTorch-convention input: NCHW with a single input channel.
    x = jax.random.normal(kx, (batch, 1, input_size[0], input_size[1]), jnp.float32)

    out = jax.jit(forward)(x)
    out = jax.block_until_ready(out)
    assert out.shape == (batch, 2) and out.dtype == jnp.float32

    ref = reference_forward(x, convs, fc_w, fc_b)
    ref = jax.block_until_ready(ref)
    max_err = float(np.max(np.abs(np.asarray(out) - np.asarray(ref))))
    # bf16 MXU operands vs HIGHEST-precision f32 reference -> slightly looser tolerance.
    assert max_err < 3e-2, f"kernel/reference mismatch, max abs err = {max_err}"

    print("KERNEL_OK")
</pallas_src>

<mosaic_0001>
module attributes {stable_mosaic.version = 11 : i64} {
  func.func @kernel(%arg0: i32, %arg1: memref<32x16xf32, #tpu.memory_space<vmem>>, %arg2: memref<3x16x64xbf16, #tpu.memory_space<vmem>>, %arg3: memref<1x64xf32, #tpu.memory_space<vmem>>, %arg4: memref<64x32xbf16, #tpu.memory_space<vmem>>, %arg5: memref<3x32x64xbf16, #tpu.memory_space<vmem>>, %arg6: memref<1x64xf32, #tpu.memory_space<vmem>>, %arg7: memref<64x32xbf16, #tpu.memory_space<vmem>>, %arg8: memref<4x32x2xbf16, #tpu.memory_space<vmem>>, %arg9: memref<1x2xf32, #tpu.memory_space<vmem>>, %arg10: memref<2x2xf32, #tpu.memory_space<vmem>>, %arg11: memref<32x32xf32, #tpu.memory_space<vmem>>, %arg12: memref<16x32xf32, #tpu.memory_space<vmem>>, %arg13: memref<8x32xf32, #tpu.memory_space<vmem>>) attributes {dimension_semantics = [#tpu.dimension_semantics<arbitrary>], iteration_bounds = array<i64: 1>, scalar_prefetch = 0 : i64, scratch_operands = 3 : i64, tpu.core_type = #tpu.core_type<tc>, window_params = [{pipeline_mode = #tpu.pipeline_mode<synchronous>, transform_indices = @transform_0, window_bounds = array<i64: 32, 16>}, {pipeline_mode = #tpu.pipeline_mode<synchronous>, transform_indices = @transform_1, window_bounds = array<i64: 3, 16, 64>}, {pipeline_mode = #tpu.pipeline_mode<synchronous>, transform_indices = @transform_2, window_bounds = array<i64: 1, 64>}, {pipeline_mode = #tpu.pipeline_mode<synchronous>, transform_indices = @transform_3, window_bounds = array<i64: 64, 32>}, {pipeline_mode = #tpu.pipeline_mode<synchronous>, transform_indices = @transform_4, window_bounds = array<i64: 3, 32, 64>}, {pipeline_mode = #tpu.pipeline_mode<synchronous>, transform_indices = @transform_5, window_bounds = array<i64: 1, 64>}, {pipeline_mode = #tpu.pipeline_mode<synchronous>, transform_indices = @transform_6, window_bounds = array<i64: 64, 32>}, {pipeline_mode = #tpu.pipeline_mode<synchronous>, transform_indices = @transform_7, window_bounds = array<i64: 4, 32, 2>}, {pipeline_mode = #tpu.pipeline_mode<synchronous>, transform_indices = @transform_8, window_bounds = array<i64: 1, 2>}, {pipeline_mode = #tpu.pipeline_mode<synchronous>, transform_indices = @transform_9, window_bounds = array<i64: 2, 2>}]} {
    %c0 = arith.constant 0 : index
    %c0_0 = arith.constant 0 : index
    %0 = vector.load %arg1[%c0, %c0_0] : memref<32x16xf32, #tpu.memory_space<vmem>>, vector<32x16xf32>
    %1 = tpu.iota {dimensions = array<i32: 0>} : vector<32x1xi32>
    %c16_i32 = arith.constant 16 : i32
    %c0_i32 = arith.constant 0 : i32
    %2 = arith.cmpi eq, %c16_i32, %c0_i32 : i32
    %c1_i32 = arith.constant 1 : i32
    %3 = arith.select %2, %c1_i32, %c16_i32 : i32
    %4 = vector.broadcast %3 : i32 to vector<32x1xi32>
    %5 = arith.remsi %1, %4 : vector<32x1xi32>
    %c0_i32_1 = arith.constant 0 : i32
    %6 = vector.broadcast %c0_i32_1 : i32 to vector<32x1xi32>
    %7 = arith.cmpi ne, %5, %6 : vector<32x1xi32>
    %c0_i32_2 = arith.constant 0 : i32
    %8 = vector.broadcast %c0_i32_2 : i32 to vector<32x1xi32>
    %9 = arith.cmpi slt, %5, %8 : vector<32x1xi32>
    %c0_i32_3 = arith.constant 0 : i32
    %10 = arith.cmpi slt, %3, %c0_i32_3 : i32
    %11 = vector.broadcast %10 : i1 to vector<32x1xi1>
    %12 = vector.broadcast %11 : vector<32x1xi1> to vector<32x1xi1>
    %13 = arith.xori %9, %12 : vector<32x1xi1>
    %14 = arith.andi %13, %7 : vector<32x1xi1>
    %15 = vector.broadcast %3 : i32 to vector<32x1xi32>
    %16 = arith.addi %5, %15 : vector<32x1xi32>
    %17 = arith.select %14, %16, %5 : vector<32x1xi1>, vector<32x1xi32>
    %c0_i32_4 = arith.constant 0 : i32
    %18 = vector.broadcast %c0_i32_4 : i32 to vector<32x1xi32>
    %19 = arith.cmpi sgt, %17, %18 : vector<32x1xi32>
    %c1_i32_5 = arith.constant 1 : i32
    %20 = tpu.dynamic_rotate %0 by %c1_i32_5 dim 0 : vector<32x16xf32>, i32 -> vector<32x16xf32>
    %cst = arith.constant 0.000000e+00 : f32
    %21 = vector.shape_cast %19 : vector<32x1xi1> to vector<32x1xi1>
    %22 = vector.broadcast %21 : vector<32x1xi1> to vector<32x16xi1>
    %23 = vector.broadcast %cst : f32 to vector<32x16xf32>
    %24 = arith.select %22, %20, %23 : vector<32x16xi1>, vector<32x16xf32>
    %c15_i32 = arith.constant 15 : i32
    %25 = vector.broadcast %c15_i32 : i32 to vector<32x1xi32>
    %26 = arith.cmpi slt, %17, %25 : vector<32x1xi32>
    %c31_i32 = arith.constant 31 : i32
    %27 = tpu.dynamic_rotate %0 by %c31_i32 dim 0 : vector<32x16xf32>, i32 -> vector<32x16xf32>
    %cst_6 = arith.constant 0.000000e+00 : f32
    %28 = vector.shape_cast %26 : vector<32x1xi1> to vector<32x1xi1>
    %29 = vector.broadcast %28 : vector<32x1xi1> to vector<32x16xi1>
    %30 = vector.broadcast %cst_6 : f32 to vector<32x16xf32>
    %31 = arith.select %29, %27, %30 : vector<32x16xi1>, vector<32x16xf32>
    %32 = arith.truncf %24 : vector<32x16xf32> to vector<32x16xbf16>
    %c0_7 = arith.constant 0 : index
    %c0_8 = arith.constant 0 : index
    %c0_9 = arith.constant 0 : index
    %33 = vector.load %arg2[%c0_7, %c0_8, %c0_9] : memref<3x16x64xbf16, #tpu.memory_space<vmem>>, vector<1x16x64xbf16>
    %34 = vector.shape_cast %33 : vector<1x16x64xbf16> to vector<16x64xbf16>
    %cst_10 = arith.constant dense<0.000000e+00> : vector<32x64xf32>
    %35 = tpu.matmul %32, %34, %cst_10 {dimension_numbers = #tpu.dot_dimension_numbers<[1], [0], [0], [1], [0, 0, 1, 1], [], []>} : vector<32x16xbf16>, vector<16x64xbf16>, vector<32x64xf32> -> vector<32x64xf32>
    %36 = arith.truncf %0 : vector<32x16xf32> to vector<32x16xbf16>
    %c1 = arith.constant 1 : index
    %c0_11 = arith.constant 0 : index
    %c0_12 = arith.constant 0 : index
    %37 = vector.load %arg2[%c1, %c0_11, %c0_12] : memref<3x16x64xbf16, #tpu.memory_space<vmem>>, vector<1x16x64xbf16>
    %38 = vector.shape_cast %37 : vector<1x16x64xbf16> to vector<16x64xbf16>
    %cst_13 = arith.constant dense<0.000000e+00> : vector<32x64xf32>
    %39 = tpu.matmul %36, %38, %cst_13 {dimension_numbers = #tpu.dot_dimension_numbers<[1], [0], [0], [1], [0, 0, 1, 1], [], []>} : vector<32x16xbf16>, vector<16x64xbf16>, vector<32x64xf32> -> vector<32x64xf32>
    %40 = arith.addf %35, %39 : vector<32x64xf32>
    %41 = arith.truncf %31 : vector<32x16xf32> to vector<32x16xbf16>
    %c2 = arith.constant 2 : index
    %c0_14 = arith.constant 0 : index
    %c0_15 = arith.constant 0 : index
    %42 = vector.load %arg2[%c2, %c0_14, %c0_15] : memref<3x16x64xbf16, #tpu.memory_space<vmem>>, vector<1x16x64xbf16>
    %43 = vector.shape_cast %42 : vector<1x16x64xbf16> to vector<16x64xbf16>
    %cst_16 = arith.constant dense<0.000000e+00> : vector<32x64xf32>
    %44 = tpu.matmul %41, %43, %cst_16 {dimension_numbers = #tpu.dot_dimension_numbers<[1], [0], [0], [1], [0, 0, 1, 1], [], []>} : vector<32x16xbf16>, vector<16x64xbf16>, vector<32x64xf32> -> vector<32x64xf32>
    %45 = arith.addf %40, %44 : vector<32x64xf32>
    %c0_17 = arith.constant 0 : index
    %c0_18 = arith.constant 0 : index
    %46 = vector.load %arg3[%c0_17, %c0_18] : memref<1x64xf32, #tpu.memory_space<vmem>>, vector<1x64xf32>
    %47 = vector.broadcast %46 : vector<1x64xf32> to vector<32x64xf32>
    %48 = arith.addf %45, %47 : vector<32x64xf32>
    %cst_19 = arith.constant 0.000000e+00 : f32
    %49 = vector.broadcast %cst_19 : f32 to vector<32x64xf32>
    %50 = arith.cmpf oge, %48, %49 : vector<32x64xf32>
    %cst_20 = arith.constant 0.00999999977 : f32
    %51 = vector.broadcast %cst_20 : f32 to vector<32x64xf32>
    %52 = arith.mulf %51, %48 : vector<32x64xf32>
    %53 = arith.select %50, %48, %52 : vector<32x64xi1>, vector<32x64xf32>
    %c60_i32 = arith.constant 60 : i32
    %54 = tpu.dynamic_rotate %53 by %c60_i32 dim 1 : vector<32x64xf32>, i32 -> vector<32x64xf32>
    %55 = arith.maximumf %53, %54 : vector<32x64xf32>
    %56 = arith.truncf %55 : vector<32x64xf32> to vector<32x64xbf16>
    %c0_21 = arith.constant 0 : index
    %c0_22 = arith.constant 0 : index
    %57 = vector.load %arg4[%c0_21, %c0_22] : memref<64x32xbf16, #tpu.memory_space<vmem>>, vector<64x32xbf16>
    %cst_23 = arith.constant dense<0.000000e+00> : vector<32x32xf32>
    %58 = tpu.matmul %56, %57, %cst_23 {dimension_numbers = #tpu.dot_dimension_numbers<[1], [0], [0], [1], [0, 0, 1, 1], [], []>} : vector<32x64xbf16>, vector<64x32xbf16>, vector<32x32xf32> -> vector<32x32xf32>
    %c0_24 = arith.constant 0 : index
    %c0_25 = arith.constant 0 : index
    %59 = vector.load %arg11[%c0_24, %c0_25] : memref<32x32xf32, #tpu.memory_space<vmem>>, vector<32x32xf32>
    tpu.vector_store %arg11[%c0_24, %c0_25], %58 {strides = array<i32>} : memref<32x32xf32, #tpu.memory_space<vmem>>, vector<32x32xf32>,
    %c0_26 = arith.constant 0 : index
    %c0_27 = arith.constant 0 : index
    %60 = tpu.strided_load %arg11[%c0_26, %c0_27] {strides = array<i32: 2, 1>} : memref<32x32xf32, #tpu.memory_space<vmem>>, vector<16x32xf32>
    %c1_28 = arith.constant 1 : index
    %c0_29 = arith.constant 0 : index
    %61 = tpu.strided_load %arg11[%c1_28, %c0_29] {strides = array<i32: 2, 1>} : memref<32x32xf32, #tpu.memory_space<vmem>>, vector<16x32xf32>
    %62 = arith.maximumf %60, %61 : vector<16x32xf32>
    %63 = tpu.iota {dimensions = array<i32: 0>} : vector<16x1xi32>
    %c8_i32 = arith.constant 8 : i32
    %c0_i32_30 = arith.constant 0 : i32
    %64 = arith.cmpi eq, %c8_i32, %c0_i32_30 : i32
    %c1_i32_31 = arith.constant 1 : i32
    %65 = arith.select %64, %c1_i32_31, %c8_i32 : i32
    %66 = vector.broadcast %65 : i32 to vector<16x1xi32>
    %67 = arith.remsi %63, %66 : vector<16x1xi32>
    %c0_i32_32 = arith.constant 0 : i32
    %68 = vector.broadcast %c0_i32_32 : i32 to vector<16x1xi32>
    %69 = arith.cmpi ne, %67, %68 : vector<16x1xi32>
    %c0_i32_33 = arith.constant 0 : i32
    %70 = vector.broadcast %c0_i32_33 : i32 to vector<16x1xi32>
    %71 = arith.cmpi slt, %67, %70 : vector<16x1xi32>
    %c0_i32_34 = arith.constant 0 : i32
    %72 = arith.cmpi slt, %65, %c0_i32_34 : i32
    %73 = vector.broadcast %72 : i1 to vector<16x1xi1>
    %74 = vector.broadcast %73 : vector<16x1xi1> to vector<16x1xi1>
    %75 = arith.xori %71, %74 : vector<16x1xi1>
    %76 = arith.andi %75, %69 : vector<16x1xi1>
    %77 = vector.broadcast %65 : i32 to vector<16x1xi32>
    %78 = arith.addi %67, %77 : vector<16x1xi32>
    %79 = arith.select %76, %78, %67 : vector<16x1xi1>, vector<16x1xi32>
    %c0_i32_35 = arith.constant 0 : i32
    %80 = vector.broadcast %c0_i32_35 : i32 to vector<16x1xi32>
    %81 = arith.cmpi sgt, %79, %80 : vector<16x1xi32>
    %c1_i32_36 = arith.constant 1 : i32
    %82 = tpu.dynamic_rotate %62 by %c1_i32_36 dim 0 : vector<16x32xf32>, i32 -> vector<16x32xf32>
    %cst_37 = arith.constant 0.000000e+00 : f32
    %83 = vector.shape_cast %81 : vector<16x1xi1> to vector<16x1xi1>
    %84 = vector.broadcast %83 : vector<16x1xi1> to vector<16x32xi1>
    %85 = vector.broadcast %cst_37 : f32 to vector<16x32xf32>
    %86 = arith.select %84, %82, %85 : vector<16x32xi1>, vector<16x32xf32>
    %c7_i32 = arith.constant 7 : i32
    %87 = vector.broadcast %c7_i32 : i32 to vector<16x1xi32>
    %88 = arith.cmpi slt, %79, %87 : vector<16x1xi32>
    %c15_i32_38 = arith.constant 15 : i32
    %89 = tpu.dynamic_rotate %62 by %c15_i32_38 dim 0 : vector<16x32xf32>, i32 -> vector<16x32xf32>
    %cst_39 = arith.constant 0.000000e+00 : f32
    %90 = vector.shape_cast %88 : vector<16x1xi1> to vector<16x1xi1>
    %91 = vector.broadcast %90 : vector<16x1xi1> to vector<16x32xi1>
    %92 = vector.broadcast %cst_39 : f32 to vector<16x32xf32>
    %93 = arith.select %91, %89, %92 : vector<16x32xi1>, vector<16x32xf32>
    %94 = arith.truncf %86 : vector<16x32xf32> to vector<16x32xbf16>
    %c0_40 = arith.constant 0 : index
    %c0_41 = arith.constant 0 : index
    %c0_42 = arith.constant 0 : index
    %95 = vector.load %arg5[%c0_40, %c0_41, %c0_42] : memref<3x32x64xbf16, #tpu.memory_space<vmem>>, vector<1x32x64xbf16>
    %96 = vector.shape_cast %95 : vector<1x32x64xbf16> to vector<32x64xbf16>
    %cst_43 = arith.constant dense<0.000000e+00> : vector<16x64xf32>
    %97 = tpu.matmul %94, %96, %cst_43 {dimension_numbers = #tpu.dot_dimension_numbers<[1], [0], [0], [1], [0, 0, 1, 1], [], []>} : vector<16x32xbf16>, vector<32x64xbf16>, vector<16x64xf32> -> vector<16x64xf32>
    %98 = arith.truncf %62 : vector<16x32xf32> to vector<16x32xbf16>
    %c1_44 = arith.constant 1 : index
    %c0_45 = arith.constant 0 : index
    %c0_46 = arith.constant 0 : index
    %99 = vector.load %arg5[%c1_44, %c0_45, %c0_46] : memref<3x32x64xbf16, #tpu.memory_space<vmem>>, vector<1x32x64xbf16>
    %100 = vector.shape_cast %99 : vector<1x32x64xbf16> to vector<32x64xbf16>
    %cst_47 = arith.constant dense<0.000000e+00> : vector<16x64xf32>
    %101 = tpu.matmul %98, %100, %cst_47 {dimension_numbers = #tpu.dot_dimension_numbers<[1], [0], [0], [1], [0, 0, 1, 1], [], []>} : vector<16x32xbf16>, vector<32x64xbf16>, vector<16x64xf32> -> vector<16x64xf32>
    %102 = arith.addf %97, %101 : vector<16x64xf32>
    %103 = arith.truncf %93 : vector<16x32xf32> to vector<16x32xbf16>
    %c2_48 = arith.constant 2 : index
    %c0_49 = arith.constant 0 : index
    %c0_50 = arith.constant 0 : index
    %104 = vector.load %arg5[%c2_48, %c0_49, %c0_50] : memref<3x32x64xbf16, #tpu.memory_space<vmem>>, vector<1x32x64xbf16>
    %105 = vector.shape_cast %104 : vector<1x32x64xbf16> to vector<32x64xbf16>
    %cst_51 = arith.constant dense<0.000000e+00> : vector<16x64xf32>
    %106 = tpu.matmul %103, %105, %cst_51 {dimension_numbers = #tpu.dot_dimension_numbers<[1], [0], [0], [1], [0, 0, 1, 1], [], []>} : vector<16x32xbf16>, vector<32x64xbf16>, vector<16x64xf32> -> vector<16x64xf32>
    %107 = arith.addf %102, %106 : vector<16x64xf32>
    %c0_52 = arith.constant 0 : index
    %c0_53 = arith.constant 0 : index
    %108 = vector.load %arg6[%c0_52, %c0_53] : memref<1x64xf32, #tpu.memory_space<vmem>>, vector<1x64xf32>
    %109 = vector.broadcast %108 : vector<1x64xf32> to vector<16x64xf32>
    %110 = arith.addf %107, %109 : vector<16x64xf32>
    %cst_54 = arith.constant 0.000000e+00 : f32
    %111 = vector.broadcast %cst_54 : f32 to vector<16x64xf32>
    %112 = arith.cmpf oge, %110, %111 : vector<16x64xf32>
    %cst_55 = arith.constant 0.00999999977 : f32
    %113 = vector.broadcast %cst_55 : f32 to vector<16x64xf32>
    %114 = arith.mulf %113, %110 : vector<16x64xf32>
    %115 = arith.select %112, %110, %114 : vector<16x64xi1>, vector<16x64xf32>
    %c56_i32 = arith.constant 56 : i32
    %116 = tpu.dynamic_rotate %115 by %c56_i32 dim 1 : vector<16x64xf32>, i32 -> vector<16x64xf32>
    %117 = arith.maximumf %115, %116 : vector<16x64xf32>
    %118 = arith.truncf %117 : vector<16x64xf32> to vector<16x64xbf16>
    %c0_56 = arith.constant 0 : index
    %c0_57 = arith.constant 0 : index
    %119 = vector.load %arg7[%c0_56, %c0_57] : memref<64x32xbf16, #tpu.memory_space<vmem>>, vector<64x32xbf16>
    %cst_58 = arith.constant dense<0.000000e+00> : vector<16x32xf32>
    %120 = tpu.matmul %118, %119, %cst_58 {dimension_numbers = #tpu.dot_dimension_numbers<[1], [0], [0], [1], [0, 0, 1, 1], [], []>} : vector<16x64xbf16>, vector<64x32xbf16>, vector<16x32xf32> -> vector<16x32xf32>
    %c0_59 = arith.constant 0 : index
    %c0_60 = arith.constant 0 : index
    %121 = vector.load %arg12[%c0_59, %c0_60] : memref<16x32xf32, #tpu.memory_space<vmem>>, vector<16x32xf32>
    tpu.vector_store %arg12[%c0_59, %c0_60], %120 {strides = array<i32>} : memref<16x32xf32, #tpu.memory_space<vmem>>, vector<16x32xf32>,
    %c0_61 = arith.constant 0 : index
    %c0_62 = arith.constant 0 : index
    %122 = tpu.strided_load %arg12[%c0_61, %c0_62] {strides = array<i32: 2, 1>} : memref<16x32xf32, #tpu.memory_space<vmem>>, vector<8x32xf32>
    %c1_63 = arith.constant 1 : index
    %c0_64 = arith.constant 0 : index
    %123 = tpu.strided_load %arg12[%c1_63, %c0_64] {strides = array<i32: 2, 1>} : memref<16x32xf32, #tpu.memory_space<vmem>>, vector<8x32xf32>
    %124 = arith.maximumf %122, %123 : vector<8x32xf32>
    %c0_65 = arith.constant 0 : index
    %c0_66 = arith.constant 0 : index
    %125 = vector.load %arg13[%c0_65, %c0_66] : memref<8x32xf32, #tpu.memory_space<vmem>>, vector<8x32xf32>
    tpu.vector_store %arg13[%c0_65, %c0_66], %124 {strides = array<i32>} : memref<8x32xf32, #tpu.memory_space<vmem>>, vector<8x32xf32>,
    %cst_67 = arith.constant 0.000000e+00 : f32
    %126 = vector.broadcast %cst_67 : f32 to vector<2x2xf32>
    %c0_68 = arith.constant 0 : index
    %c0_69 = arith.constant 0 : index
    %127 = vector.load %arg9[%c0_68, %c0_69] : memref<1x2xf32, #tpu.memory_space<vmem>>, vector<1x2xf32>
    %128 = vector.broadcast %127 : vector<1x2xf32> to vector<2x2xf32>
    %129 = arith.addf %126, %128 : vector<2x2xf32>
    %c0_70 = arith.constant 0 : index
    %c0_71 = arith.constant 0 : index
    %130 = tpu.strided_load %arg13[%c0_70, %c0_71] {strides = array<i32: 4, 1>} : memref<8x32xf32, #tpu.memory_space<vmem>>, vector<2x32xf32>
    %131 = arith.truncf %130 : vector<2x32xf32> to vector<2x32xbf16>
    %c0_72 = arith.constant 0 : index
    %c0_73 = arith.constant 0 : index
    %c0_74 = arith.constant 0 : index
    %132 = vector.load %arg8[%c0_72, %c0_73, %c0_74] : memref<4x32x2xbf16, #tpu.memory_space<vmem>>, vector<1x32x2xbf16>
    %133 = vector.shape_cast %132 : vector<1x32x2xbf16> to vector<32x2xbf16>
    %cst_75 = arith.constant dense<0.000000e+00> : vector<2x2xf32>
    %134 = tpu.matmul %131, %133, %cst_75 {dimension_numbers = #tpu.dot_dimension_numbers<[1], [0], [0], [1], [0, 0, 1, 1], [], []>} : vector<2x32xbf16>, vector<32x2xbf16>, vector<2x2xf32> -> vector<2x2xf32>
    %135 = arith.addf %129, %134 : vector<2x2xf32>
    %c1_76 = arith.constant 1 : index
    %c0_77 = arith.constant 0 : index
    %136 = tpu.strided_load %arg13[%c1_76, %c0_77] {strides = array<i32: 4, 1>} : memref<8x32xf32, #tpu.memory_space<vmem>>, vector<2x32xf32>
    %137 = arith.truncf %136 : vector<2x32xf32> to vector<2x32xbf16>
    %c1_78 = arith.constant 1 : index
    %c0_79 = arith.constant 0 : index
    %c0_80 = arith.constant 0 : index
    %138 = vector.load %arg8[%c1_78, %c0_79, %c0_80] : memref<4x32x2xbf16, #tpu.memory_space<vmem>>, vector<1x32x2xbf16>
    %139 = vector.shape_cast %138 : vector<1x32x2xbf16> to vector<32x2xbf16>
    %cst_81 = arith.constant dense<0.000000e+00> : vector<2x2xf32>
    %140 = tpu.matmul %137, %139, %cst_81 {dimension_numbers = #tpu.dot_dimension_numbers<[1], [0], [0], [1], [0, 0, 1, 1], [], []>} : vector<2x32xbf16>, vector<32x2xbf16>, vector<2x2xf32> -> vector<2x2xf32>
    %141 = arith.addf %135, %140 : vector<2x2xf32>
    %c2_82 = arith.constant 2 : index
    %c0_83 = arith.constant 0 : index
    %142 = tpu.strided_load %arg13[%c2_82, %c0_83] {strides = array<i32: 4, 1>} : memref<8x32xf32, #tpu.memory_space<vmem>>, vector<2x32xf32>
    %143 = arith.truncf %142 : vector<2x32xf32> to vector<2x32xbf16>
    %c2_84 = arith.constant 2 : index
    %c0_85 = arith.constant 0 : index
    %c0_86 = arith.constant 0 : index
    %144 = vector.load %arg8[%c2_84, %c0_85, %c0_86] : memref<4x32x2xbf16, #tpu.memory_space<vmem>>, vector<1x32x2xbf16>
    %145 = vector.shape_cast %144 : vector<1x32x2xbf16> to vector<32x2xbf16>
    %cst_87 = arith.constant dense<0.000000e+00> : vector<2x2xf32>
    %146 = tpu.matmul %143, %145, %cst_87 {dimension_numbers = #tpu.dot_dimension_numbers<[1], [0], [0], [1], [0, 0, 1, 1], [], []>} : vector<2x32xbf16>, vector<32x2xbf16>, vector<2x2xf32> -> vector<2x2xf32>
    %147 = arith.addf %141, %146 : vector<2x2xf32>
    %c3 = arith.constant 3 : index
    %c0_88 = arith.constant 0 : index
    %148 = tpu.strided_load %arg13[%c3, %c0_88] {strides = array<i32: 4, 1>} : memref<8x32xf32, #tpu.memory_space<vmem>>, vector<2x32xf32>
    %149 = arith.truncf %148 : vector<2x32xf32> to vector<2x32xbf16>
    %c3_89 = arith.constant 3 : index
    %c0_90 = arith.constant 0 : index
    %c0_91 = arith.constant 0 : index
    %150 = vector.load %arg8[%c3_89, %c0_90, %c0_91] : memref<4x32x2xbf16, #tpu.memory_space<vmem>>, vector<1x32x2xbf16>
    %151 = vector.shape_cast %150 : vector<1x32x2xbf16> to vector<32x2xbf16>
    %cst_92 = arith.constant dense<0.000000e+00> : vector<2x2xf32>
    %152 = tpu.matmul %149, %151, %cst_92 {dimension_numbers = #tpu.dot_dimension_numbers<[1], [0], [0], [1], [0, 0, 1, 1], [], []>} : vector<2x32xbf16>, vector<32x2xbf16>, vector<2x2xf32> -> vector<2x2xf32>
    %153 = arith.addf %147, %152 : vector<2x2xf32>
    %c0_93 = arith.constant 0 : index
    %c0_94 = arith.constant 0 : index
    %154 = vector.load %arg10[%c0_93, %c0_94] : memref<2x2xf32, #tpu.memory_space<vmem>>, vector<2x2xf32>
    tpu.vector_store %arg10[%c0_93, %c0_94], %153 {strides = array<i32>} : memref<2x2xf32, #tpu.memory_space<vmem>>, vector<2x2xf32>,
    return
  }
  func.func @transform_0(%arg0: i32) -> (i32, i32) {
    %c0_i32 = arith.constant 0 : i32
    %c0_i32_0 = arith.constant 0 : i32
    %c0_i32_1 = arith.constant 0 : i32
    return %c0_i32, %c0_i32_0 : i32, i32
  }
  func.func @transform_1(%arg0: i32) -> (i32, i32, i32) {
    %c0_i32 = arith.constant 0 : i32
    %c0_i32_0 = arith.constant 0 : i32
    %c0_i32_1 = arith.constant 0 : i32
    %c0_i32_2 = arith.constant 0 : i32
    return %c0_i32, %c0_i32_0, %c0_i32_1 : i32, i32, i32
  }
  func.func @transform_2(%arg0: i32) -> (i32, i32) {
    %c0_i32 = arith.constant 0 : i32
    %c0_i32_0 = arith.constant 0 : i32
    %c0_i32_1 = arith.constant 0 : i32
    return %c0_i32, %c0_i32_0 : i32, i32
  }
  func.func @transform_3(%arg0: i32) -> (i32, i32) {
    %c0_i32 = arith.constant 0 : i32
    %c0_i32_0 = arith.constant 0 : i32
    %c0_i32_1 = arith.constant 0 : i32
    return %c0_i32, %c0_i32_0 : i32, i32
  }
  func.func @transform_4(%arg0: i32) -> (i32, i32, i32) {
    %c0_i32 = arith.constant 0 : i32
    %c0_i32_0 = arith.constant 0 : i32
    %c0_i32_1 = arith.constant 0 : i32
    %c0_i32_2 = arith.constant 0 : i32
    return %c0_i32, %c0_i32_0, %c0_i32_1 : i32, i32, i32
  }
  func.func @transform_5(%arg0: i32) -> (i32, i32) {
    %c0_i32 = arith.constant 0 : i32
    %c0_i32_0 = arith.constant 0 : i32
    %c0_i32_1 = arith.constant 0 : i32
    return %c0_i32, %c0_i32_0 : i32, i32
  }
  func.func @transform_6(%arg0: i32) -> (i32, i32) {
    %c0_i32 = arith.constant 0 : i32
    %c0_i32_0 = arith.constant 0 : i32
    %c0_i32_1 = arith.constant 0 : i32
    return %c0_i32, %c0_i32_0 : i32, i32
  }
  func.func @transform_7(%arg0: i32) -> (i32, i32, i32) {
    %c0_i32 = arith.constant 0 : i32
    %c0_i32_0 = arith.constant 0 : i32
    %c0_i32_1 = arith.constant 0 : i32
    %c0_i32_2 = arith.constant 0 : i32
    return %c0_i32, %c0_i32_0, %c0_i32_1 : i32, i32, i32
  }
  func.func @transform_8(%arg0: i32) -> (i32, i32) {
    %c0_i32 = arith.constant 0 : i32
    %c0_i32_0 = arith.constant 0 : i32
    %c0_i32_1 = arith.constant 0 : i32
    return %c0_i32, %c0_i32_0 : i32, i32
  }
  func.func @transform_9(%arg0: i32) -> (i32, i32) {
    %c0_i32 = arith.constant 0 : i32
    %c0_i32_0 = arith.constant 0 : i32
    %c0_i32_1 = arith.constant 0 : i32
    return %c0_i32, %c0_i32_0 : i32, i32
  }
}

</mosaic_0001>

<bundles_post_ra>
// kernel: forward.1
= control target key start
LH: loop header
LB: loop body
LE: loop exit
PB: predicated region body
PF: predicated region fallthrough
CT: control target
= control target key end

     0   :  { %14 = vsyncpa [#allocation6], 0  ;;  %s1506_s0 = inlined_call_operand.hbm [shape: f32[32,16], index: 0, kind: input, shape index: {}]   ;;  %s1507_s1 = inlined_call_operand.hbm [shape: bf16[3,16,64], index: 1, kind: input, shape index: {}]   ;;  %s1508_s2 = inlined_call_operand.vmem [shape: f32[1,64], index: 2, kind: input, shape index: {}]   ;;  %s1509_s3 = inlined_call_operand.hbm [shape: bf16[64,32], index: 3, kind: input, shape index: {}]   ;;  %s1510_s4 = inlined_call_operand.hbm [shape: bf16[3,32,64], index: 4, kind: input, shape index: {}]   ;;  %s1511_s5 = inlined_call_operand.vmem [shape: f32[1,64], index: 5, kind: input, shape index: {}]   ;;  %s1512_s6 = inlined_call_operand.hbm [shape: bf16[64,32], index: 6, kind: input, shape index: {}]   ;;  %s1513_s7 = inlined_call_operand.hbm [shape: bf16[4,32,2], index: 7, kind: input, shape index: {}]   ;;  %s1514_s8 = inlined_call_operand.vmem [shape: f32[1,2], index: 8, kind: input, shape index: {}]   ;;  %s1515_s9 = inlined_call_operand.hbm [shape: f32[2,2], index: 9, kind: output, shape index: {}]  }
   0x1   :  { %15 = vsyncpa [#allocation9], 0 }
   0x2   :  { %16 = vsyncpa [#allocation12], 0 }
   0x3   :  { %17 = vsyncpa [#allocation15], 0  ;;  %s36_s11 = sshll.u32 %s1507_s1, 4  ;;  %s37_s11 = int_to_ptr.hbm [resolvable:$true] %s36_s11 }
   0x4   :  { %18 = vsyncpa [#allocation7], 0  ;;  %s1284_s12 = smov [#allocation8]   ;;  %s64_s16 = sshll.u32 %s1510_s4, 4  ;;  %s65_s16 = int_to_ptr.hbm [resolvable:$true] %s64_s16 }
   0x5   :  { %s38_s13 = sshll.u32 %s1284_s12, 4  ;;  %s1285_s17 = smov 64   ;;  %s39_s13 = int_to_ptr.vmem [resolvable:$true] %s38_s13 }
   0x6   :  { %s1286_s18 = smov 4   ;;  %s1287_s19 = smov [#allocation11]  }
   0x7   :  { %44 = dma.hbm_to_vmem [thread:$0]  %s37_s11, 384, %s39_s13, [#allocation9], %s1285_s17, %s1285_s17, %s1286_s18  }
   0x8   :  { %s66_s20 = sshll.u32 %s1287_s19, 4  ;;  %s23_s22 = sshll.u32 %s1506_s0, 4  ;;  %s67_s20 = int_to_ptr.vmem [resolvable:$true] %s66_s20  ;;  %s24_s22 = int_to_ptr.hbm [resolvable:$true] %s23_s22 }
   0x9   :  { %72 = dma.hbm_to_vmem [thread:$0]  %s65_s16, 768, %s67_s20, [#allocation12], %s1285_s17, %s1285_s17, %s1286_s18  }
   0xa   :  { %s1288_s4 = smov [#allocation5]   ;;  %s51_s26 = sshll.u32 %s1509_s3, 4  ;;  %s52_s26 = int_to_ptr.hbm [resolvable:$true] %s51_s26 }
   0xb   :  { %s25_s23 = sshll.u32 %s1288_s4, 4  ;;  %s1289_s27 = smov 128   ;;  %s26_s23 = int_to_ptr.vmem [resolvable:$true] %s25_s23 }
   0xc   :  { %s1290_s28 = smov 8   ;;  %s1291_s29 = smov [#allocation10]  }
   0xd   :  { %31 = dma.hbm_to_vmem [thread:$0]  %s24_s22, 512, %s26_s23, [#allocation6], %s1289_s27, %s1289_s27, %s1290_s28  }
   0xe   :  { %s53_s30 = sshll.u32 %s1291_s29, 4  ;;  %s79_s11 = sshll.u32 %s1512_s6, 4  ;;  %s54_s30 = int_to_ptr.vmem [resolvable:$true] %s53_s30  ;;  %s80_s11 = int_to_ptr.hbm [resolvable:$true] %s79_s11 }
   0xf   :  { %59 = dma.hbm_to_vmem [thread:$0]  %s52_s26, 512, %s54_s30, [#allocation9], %s1285_s17, %s1285_s17, %s1286_s18  }
  0x10   :  { %s92_s3 = sshll.u32 %s1513_s7, 4  ;;  %s1292_s14 = smov [#allocation13]   ;;  %s93_s3 = int_to_ptr.hbm [resolvable:$true] %s92_s3 }
  0x11   :  { %s81_s15 = sshll.u32 %s1292_s14, 4  ;;  %s1293_s16 = smov [#allocation14]   ;;  %s82_s15 = int_to_ptr.vmem [resolvable:$true] %s81_s15 }
  0x12   :  { %87 = dma.hbm_to_vmem [thread:$0]  %s80_s11, 512, %s82_s15, [#allocation12], %s1285_s17, %s1285_s17, %s1286_s18  }
  0x13   :  { %s94_s6 = sshll.u32 %s1293_s16, 4  ;;  %s95_s6 = int_to_ptr.vmem [resolvable:$true] %s94_s6 }
  0x14   :  { %100 = dma.hbm_to_vmem [thread:$0]  %s93_s3, 1024, %s95_s6, [#allocation15], %s1285_s17, %s1285_s17, %s1286_s18  }
  0x15   :  { %1274 = dma.done.wait [#allocation6], 512  }
  0x16   :  { %1275 = vsyncadd [#allocation6], 4294966784 }
  0x17   :  { %1276 = dma.done.wait [#allocation9], 896  }
  0x18   :  { %1277 = vsyncadd [#allocation9], 4294966400 }
  0x19   :  { %1278 = dma.done.wait [#allocation12], 1280  }
  0x1a   :  { %1279 = vsyncadd [#allocation12], 4294966016 }
  0x1b   :  { %1280 = dma.done.wait [#allocation15], 1024  }
  0x1c   :  { %1281 = vsyncadd [#allocation15], 4294966272  ;;  %v132_v0 = vlaneseq  ;;  %v1021_v5 = vld [vmem:[#allocation8 + $0x8] sm:$0xff]  ;;  %v1020_v6 = vld [vmem:[#allocation8] sm:$0xff]  ;;  %vm250_vm0 = vcmask 130048   ;;  %vm367_vm11 = vcmask 1048064  }
  0x1d   :  { %v1022_v7 = vld [vmem:[#allocation8 + $0x10] sm:$0xff]  ;;  %v128_v8 = vld [vmem:[#allocation5] sm:$0xff]  ;;  %v129_v9 = vld [vmem:[#allocation5 + $0x8] sm:$0xff]  ;;  %264 = vmatpush.bf16.msra.mxu0 %v1021_v5  ;;  %295 = vmatpush.bf16.msra.mxu1 %v1020_v6  ;;  %vm446_vm12 = vcmask 523264   ;;  %vm472_vm13 = vcmask 261120   ;;  %s1296_s1 = smov [#allocation16]  }
  0x1e   :  { %v1380_v1 = vshrl.u32 %v132_v0, 7  ;;  %v131_v10 = vld [vmem:[#allocation5 + $0x18] sm:$0xff]  ;;  %v189_v13 = vrot.slane %v128_v8, 7  ;;  %v190_v14 = vrot.slane %v129_v9, 7  ;;  %v214_v15 = vrot.slane %v128_v8, 1  ;;  %v130_v17 = vld [vmem:[#allocation5 + $0x10] sm:$0xff]  ;;  %331 = vmatpush.bf16.msra.mxu2 %v1022_v7 }
  0x1f   :  { %v215_v16 = vrot.slane %v129_v9, 1  ;;  %v239_v18 = vpack.c.bf16 %v129_v9, %v128_v8  ;;  %v192_v19 = vrot.slane %v131_v10, 7  ;;  %v216_v20 = vrot.slane %v130_v17, 1  ;;  %v1103_v51 = vld [vmem:[%s1508_s2] ss:$0 sm:$0xff]  ;;  %s1294_s2 = smov 124  }
  0x20   :  { %v141_v2 = vand.u32 15, %v1380_v1  ;;  %v1384_v3 = vadd.s32 8, %v1380_v1  ;;  %vm193_vm1 = vcmp.lt.s32.totalorder %v1380_v1, 1  ;;  %vm218_vm4 = vcmp.lt.s32.totalorder %v1380_v1, 7  ;;  %s889_s22 = sshll.u32 %s1296_s1, 4  ;;  %s891_s24 = sshll.u32 %s1515_s9, 4  ;;  %s890_s22 = int_to_ptr.vmem [resolvable:$true] %s889_s22  ;;  %s892_s24 = int_to_ptr.hbm [resolvable:$true] %s891_s24 }
  0x21   :  { %v196_v21 = vsel %vm193_vm1, %v189_v13, %v190_v14  ;;  %v221_v22 = vsel %vm218_vm4, %v214_v15, %v215_v16  ;;  %908 = vmatmul.msk.bf16.vlgmr.msra.gmra.mxu0 %vm250_vm0, %v239_v18  ;;  %v197_v23 = vsel %vm193_vm1, %v192_v19, %v189_v13  ;;  %v220_v24 = vsel %vm218_vm4, %v215_v16, %v216_v20 }
  0x22   :  { %v148_v4 = vand.u32 15, %v1384_v3  ;;  %vm1388_vm2 = vcmp.gt.s32.totalorder %v141_v2, 0  ;;  %v135_v29 = vadd.s32 16, %v1380_v1  ;;  %v136_v30 = vadd.s32 24, %v1380_v1 }
  0x23   :  { %v206_v25 = vsel %vm1388_vm2, %v197_v23, 0.0  ;;  %v191_v32 = vrot.slane %v130_v17, 7  ;;  %v217_v34 = vrot.slane %v131_v10, 1  ;;  %v240_v37 = vpack.c.bf16 %v131_v10, %v130_v17 }
  0x24   :  { %vm1392_vm3 = vcmp.lt.s32.totalorder %v148_v4, 15  ;;  %v235_v27 = vpack.c.bf16 %v196_v21, %v206_v25  ;;  %v155_v31 = vand.u32 15, %v135_v29  ;;  %v162_v33 = vand.u32 15, %v136_v30  ;;  %v1026_v29 = vld [vmem:[#allocation10 + $0x18] sm:$0xff]  ;;  %v1025_v30 = vld [vmem:[#allocation10 + $0x10] sm:$0xff] }
  0x25   :  { %v232_v26 = vsel %vm1392_vm3, %v220_v24, 0.0  ;;  %v195_v35 = vsel %vm193_vm1, %v190_v14, %v191_v32  ;;  %v222_v36 = vsel %vm218_vm4, %v217_v34, %v214_v15  ;;  %v194_v38 = vsel %vm193_vm1, %v191_v32, %v192_v19  ;;  %457 = vmatpush.bf16.msra.mxu3 %v1026_v29 }
  0x26   :  { %v307_v28 = vpack.c.bf16 %v232_v26, %v221_v22  ;;  %914 = vmatmul.msk.bf16.vlgmr.msra.gmra.mxu1 %vm250_vm0, %v235_v27  ;;  %vm187_vm5 = vcmp.gt.s32.totalorder %v155_v31, 0  ;;  %vm213_vm6 = vcmp.lt.s32.totalorder %v162_v33, 15  ;;  %v219_v40 = vsel %vm218_vm4, %v216_v20, %v217_v34  ;;  %v1024_v31 = vld [vmem:[#allocation10 + $0x8] sm:$0xff] }
  0x27   :  { %v208_v39 = vsel %vm187_vm5, %v195_v35, 0.0  ;;  %v234_v41 = vsel %vm213_vm6, %v222_v36, 0.0 }
  0x28   :  { %920 = vmatmul.msk.bf16.vlgmr.msra.gmra.mxu2 %vm250_vm0, %v307_v28  ;;  %v236_v42 = vpack.c.bf16 %v194_v38, %v208_v39  ;;  %v308_v43 = vpack.c.bf16 %v234_v41, %v219_v40 }
  0x29   :  { %458 = vmatpush.bf16.msra.mxu3 %v1025_v30 }
  0x2d   :  { %459 = vmatpush.bf16.msra.mxu3 %v1024_v31 }
  0x31   :  { %909 = vmatmul.msk.bf16.gmra.mxu0 %vm250_vm0, %v240_v37 }
  0x36   :  { %915 = vmatmul.msk.bf16.gmra.mxu1 %vm250_vm0, %v236_v42 }
  0x38   :  { %921 = vmatmul.msk.bf16.gmra.mxu2 %vm250_vm0, %v308_v43 }
  0x9e   :  { %v266_v44 = vpop.f32.mrf.mxu0 }
  0xa3   :  { %v297_v45 = vpop.f32.mrf.mxu1 }
  0xa4   :  { %v298_v46 = vadd.f32 %v297_v45, %v266_v44  ;;  %v1023_v44 = vld [vmem:[#allocation10] sm:$0xff] }
  0xa5   :  { %460 = vmatpush.bf16.msra.mxu3 %v1023_v44 }
  0xa6   :  { %v268_v48 = vpop.f32.mrf.mxu0 }
  0xab   :  { %v333_v47 = vpop.f32.mrf.mxu2  ;;  %v299_v49 = vpop.f32.mrf.mxu1 }
  0xac   :  { %v343_v50 = vadd.f32 %v333_v47, %v298_v46  ;;  %v300_v53 = vadd.f32 %v299_v49, %v268_v48 }
  0xae   :  { %v351_v52 = vadd.f32 %v1103_v51, %v343_v50  ;;  %v271_v59 = vpop.f32.mrf.mxu0 }
  0xb0   :  { %v359_v57 = vmul.f32 0.01, %v351_v52  ;;  %vm355_vm7 = vcmp.ge.f32.partialorder %v351_v52, 0.0 }
  0xb2   :  { %v1428_v62 = vsel %vm355_vm7, %v351_v52, %v359_v57  ;;  %v1032_v57 = vld [vmem:[#allocation11 + $0x28] sm:$0xff] }
  0xb3   :  { %v335_v54 = vpop.f32.mrf.mxu2  ;;  %v302_v56 = vpop.f32.mrf.mxu1  ;;  %630 = vmatpush.bf16.msrb.mxu2 %v1032_v57 }
  0xb4   :  { %v344_v55 = vadd.f32 %v335_v54, %v300_v53  ;;  %v303_v61 = vadd.f32 %v302_v56, %v271_v59  ;;  %v1028_v59 = vld [vmem:[#allocation11 + $0x8] sm:$0xff] }
  0xb5   :  { %595 = vmatpush.bf16.msrb.mxu1 %v1028_v59 }
  0xb6   :  { %v352_v58 = vadd.f32 %v1103_v51, %v344_v55  ;;  %v273_v6 = vpop.f32.mrf.mxu0 }
  0xb8   :  { %v360_v60 = vmul.f32 0.01, %v352_v58  ;;  %vm356_vm8 = vcmp.ge.f32.partialorder %v352_v58, 0.0 }
  0xba   :  { %v364_v63 = vsel %vm356_vm8, %v352_v58, %v360_v60  ;;  %v1030_v58 = vld [vmem:[#allocation11 + $0x18] sm:$0xff]  ;;  %v1031_v60 = vld [vmem:[#allocation11 + $0x20] sm:$0xff] }
  0xbb   :  { %v338_v0 = vpop.f32.mrf.mxu2  ;;  %v1058_v2 = vpack.i.bf16 %v364_v63, %v1428_v62  ;;  %v304_v5 = vpop.f32.mrf.mxu1  ;;  %566 = vmatpush.bf16.msrb.mxu0 %v1030_v58  ;;  %631 = vmatpush.bf16.msrb.mxu2 %v1031_v60 }
  0xbc   :  { %v345_v4 = vadd.f32 %v338_v0, %v303_v61  ;;  %v305_v8 = vadd.f32 %v304_v5, %v273_v6  ;;  %v1029_v61 = vld [vmem:[#allocation11 + $0x10] sm:$0xff] }
  0xbd   :  { %1059 = vrot.lane.b32.xlu0 %v1058_v2, %s1285_s17 }
  0xbe   :  { %v353_v7 = vadd.f32 %v1103_v51, %v345_v4 }
  0xbf   :  { %567 = vmatpush.bf16.msrb.mxu0 %v1029_v61 }
  0xc0   :  { %v361_v11 = vmul.f32 0.01, %v353_v7  ;;  %vm357_vm9 = vcmp.ge.f32.partialorder %v353_v7, 0.0 }
  0xc2   :  { %v365_v14 = vsel %vm357_vm9, %v353_v7, %v361_v11  ;;  %v490_v7 = vand.u32 7, %v1380_v1 }
  0xc3   :  { %v340_v9 = vpop.f32.mrf.mxu2 }
  0xc4   :  { %v346_v10 = vadd.f32 %v340_v9, %v305_v8  ;;  %v497_v8 = vand.u32 7, %v1384_v3  ;;  %vm1454_vm14 = vcmp.gt.s32.totalorder %v490_v7, 0  ;;  %vm1462_vm0 = vcmp.lt.s32.totalorder %v490_v7, 7  ;;  %v1042_v7 = vld [vmem:[#allocation14 + $0x28] sm:$0xff] }
  0xc5   :  { %837 = vmatpush.bf16.msra.mxu2 %v1042_v7 }
  0xc6   :  { %v354_v12 = vadd.f32 %v1103_v51, %v346_v10  ;;  %vm1458_vm15 = vcmp.gt.s32.totalorder %v497_v8, 0  ;;  %vm523_vm2 = vcmp.lt.s32.totalorder %v497_v8, 7  ;;  %v1044_v8 = vld [vmem:[#allocation14 + $0x38] sm:$0xff] }
  0xc8   :  { %vm358_vm10 = vcmp.ge.f32.partialorder %v354_v12, 0.0  ;;  %v362_v13 = vmul.f32 0.01, %v354_v12 }
  0xca   :  { %v366_v15 = vsel %vm358_vm10, %v354_v12, %v362_v13  ;;  %v1037_v13 = vld [vmem:[#allocation14] sm:$0xff] }
  0xcb   :  { %v1063_v16 = vpack.i.bf16 %v366_v15, %v365_v14 }
  0xcd   :  { %1064 = vrot.lane.b32.xlu0 %v1063_v16, %s1285_s17 }
 0x12f   :  { %v1060_v17 = vpop.permute.xlu0 %1059 }
 0x130   :  { %v1062_v18 = vunpack.i.h.bf16 %v1060_v17  ;;  %v1061_v19 = vunpack.i.l.bf16 %v1060_v17 }
 0x132   :  { %v370_v20 = vsel %vm367_vm11, %v1061_v19, %v1428_v62  ;;  %v373_v21 = vsel %vm367_vm11, %v1062_v18, %v364_v63 }
 0x133   :  { %v1068_v22 = vpack.i.bf16 %v373_v21, %v370_v20 }
 0x135   :  { %1069 = vrot.lane.b32.xlu1 %v1068_v22, %s1285_s17 }
 0x13f   :  { %v1065_v23 = vpop.permute.xlu0 %1064 }
 0x140   :  { %v1067_v24 = vunpack.i.h.bf16 %v1065_v23  ;;  %v1066_v25 = vunpack.i.l.bf16 %v1065_v23 }
 0x142   :  { %v376_v26 = vsel %vm367_vm11, %v1066_v25, %v365_v14  ;;  %v379_v27 = vsel %vm367_vm11, %v1067_v24, %v366_v15 }
 0x143   :  { %v1073_v28 = vpack.i.bf16 %v379_v27, %v376_v26 }
 0x145   :  { %1074 = vrot.lane.b32.xlu1 %v1073_v28, %s1285_s17 }
 0x1a7   :  { %v1070_v32 = vpop.permute.xlu1 %1069 }
 0x1a8   :  { %v1072_v33 = vunpack.i.h.bf16 %v1070_v32  ;;  %v1071_v34 = vunpack.i.l.bf16 %v1070_v32 }
 0x1aa   :  { %v388_v35 = vsel %vm367_vm11, %v1071_v34, %v1428_v62  ;;  %v389_v36 = vsel %vm367_vm11, %v1072_v33, %v364_v63  ;;  %v1104_v34 = vld [vmem:[%s1511_s5] ss:$0 sm:$0xff]  ;;  %s1295_s5 = smov 120  }
 0x1ab   :  { %v1078_v37 = vpack.i.bf16 %v389_v36, %v388_v35 }
 0x1ad   :  { %1079 = vrot.lane.b32.xlu2 %v1078_v37, %s1294_s2 }
 0x1b7   :  { %v1075_v38 = vpop.permute.xlu1 %1074 }
 0x1b8   :  { %v1077_v39 = vunpack.i.h.bf16 %v1075_v38  ;;  %v1076_v40 = vunpack.i.l.bf16 %v1075_v38 }
 0x1ba   :  { %v390_v41 = vsel %vm367_vm11, %v1076_v40, %v365_v14  ;;  %v391_v42 = vsel %vm367_vm11, %v1077_v39, %v366_v15 }
 0x1bb   :  { %v1083_v43 = vpack.i.bf16 %v391_v42, %v390_v41 }
 0x1bd   :  { %1084 = vrot.lane.b32.xlu2 %v1083_v43, %s1294_s2 }
 0x207   :  { %v1080_v45 = vpop.permute.xlu2 %1079 }
 0x208   :  { %v1082_v46 = vunpack.i.h.bf16 %v1080_v45  ;;  %v1081_v47 = vunpack.i.l.bf16 %v1080_v45 }
 0x20a   :  { %v409_v48 = vmax.f32 %v364_v63, %v1082_v46  ;;  %v408_v49 = vmax.f32 %v1428_v62, %v1081_v47  ;;  %v1027_v62 = vld [vmem:[#allocation11] sm:$0xff] }
 0x20b   :  { %596 = vmatpush.bf16.msrb.mxu1 %v1027_v62 }
 0x20c   :  { %v412_v50 = vpack.c.bf16 %v409_v48, %v408_v49 }
 0x20e   :  { %938 = vmatmul.msk.bf16.vlgmr.msra.gmra.mxu3 %vm446_vm12, %v412_v50 }
 0x217   :  { %v1085_v51 = vpop.permute.xlu2 %1084 }
 0x218   :  { %v1087_v52 = vunpack.i.h.bf16 %v1085_v51  ;;  %v1086_v53 = vunpack.i.l.bf16 %v1085_v51 }
 0x21a   :  { %v411_v54 = vmax.f32 %v366_v15, %v1087_v52  ;;  %v410_v55 = vmax.f32 %v365_v14, %v1086_v53  ;;  %v1036_v53 = vld [vmem:[#allocation13 + $0x18] sm:$0xff]  ;;  %v1039_v14 = vld [vmem:[#allocation14 + $0x10] sm:$0xff] }
 0x21b   :  { %714 = vmatpush.bf16.msrb.mxu3 %v1036_v53 }
 0x21c   :  { %v413_v56 = vpack.c.bf16 %v411_v54, %v410_v55  ;;  %v1035_v54 = vld [vmem:[#allocation13 + $0x10] sm:$0xff]  ;;  %v1034_v55 = vld [vmem:[#allocation13 + $0x8] sm:$0xff] }
 0x21e   :  { %939 = vmatmul.msk.bf16.gmra.mxu3 %vm446_vm12, %v413_v56  ;;  %v1033_v56 = vld [vmem:[#allocation13] sm:$0xff] }
 0x21f   :  { %715 = vmatpush.bf16.msrb.mxu3 %v1035_v54 }
 0x223   :  { %716 = vmatpush.bf16.msrb.mxu3 %v1034_v55 }
 0x227   :  { %717 = vmatpush.bf16.msrb.mxu3 %v1033_v56 }
 0x22b   :  { %874 = vmatpush.bf16.msra.mxu3 %v1044_v8 }
 0x291   :  { %v462_v63 = vpop.f32.mrf.mxu3 }
 0x292   :  { %473 = vst.msk [vmem:[#allocation2] sm:$0xff] %vm472_vm13, %v462_v63 }
 0x299   :  { %v464_v0 = vpop.f32.mrf.mxu3 }
 0x29a   :  { %474 = vst.msk [vmem:[#allocation2 + $0x8] sm:$0xff] %vm472_vm13, %v464_v0 }
 0x2a1   :  { %v467_v2 = vpop.f32.mrf.mxu3  ;;  %v477_v5 = vld [vmem:[#allocation2] ss:$2 sm:$0xff]  ;;  %v481_v6 = vld [vmem:[#allocation2 + $0x1] ss:$2 sm:$0xff] }
 0x2a2   :  { %475 = vst.msk [vmem:[#allocation2 + $0x10] sm:$0xff] %vm472_vm13, %v467_v2  ;;  %v484_v9 = vmax.f32 %v477_v5, %v481_v6 }
 0x2a4   :  { %v512_v15 = vrot.slane %v484_v9, 7  ;;  %v524_v18 = vrot.slane %v484_v9, 1 }
 0x2a9   :  { %v469_v4 = vpop.f32.mrf.mxu3 }
 0x2aa   :  { %476 = vst.msk [vmem:[#allocation2 + $0x18] sm:$0xff] %vm472_vm13, %v469_v4 }
 0x2b1   :  { %v479_v10 = vld [vmem:[#allocation2 + $0x10] ss:$2 sm:$0xff]  ;;  %v483_v11 = vld [vmem:[#allocation2 + $0x11] ss:$2 sm:$0xff] }
 0x2b2   :  { %v485_v12 = vmax.f32 %v479_v10, %v483_v11  ;;  %v1040_v10 = vld [vmem:[#allocation14 + $0x18] sm:$0xff]  ;;  %v1041_v11 = vld [vmem:[#allocation14 + $0x20] sm:$0xff] }
 0x2b3   :  { %800 = vmatpush.bf16.msra.mxu1 %v1040_v10  ;;  %838 = vmatpush.bf16.msra.mxu2 %v1041_v11 }
 0x2b4   :  { %v539_v17 = vpack.c.bf16 %v485_v12, %v484_v9  ;;  %v513_v3 = vrot.slane %v485_v12, 7  ;;  %v525_v19 = vrot.slane %v485_v12, 1  ;;  %v1038_v9 = vld [vmem:[#allocation14 + $0x8] sm:$0xff]  ;;  %v1043_v12 = vld [vmem:[#allocation14 + $0x30] sm:$0xff] }
 0x2b5   :  { %763 = vmatpush.bf16.msra.mxu0 %v1038_v9  ;;  %875 = vmatpush.bf16.msra.mxu3 %v1043_v12 }
 0x2b6   :  { %948 = vmatmul.msk.bf16.vlgmr.msrb.gmra.mxu0 %vm472_vm13, %v539_v17  ;;  %v514_v20 = vsel %vm193_vm1, %v512_v15, %v513_v3  ;;  %v515_v21 = vsel %vm193_vm1, %v513_v3, %v512_v15  ;;  %v526_v22 = vsel %vm218_vm4, %v524_v18, %v525_v19  ;;  %v527_v23 = vsel %vm218_vm4, %v525_v19, %v524_v18 }
 0x2b7   :  { %v520_v24 = vsel %vm1454_vm14, %v515_v21, 0.0  ;;  %v521_v25 = vsel %vm1458_vm15, %v514_v20, 0.0  ;;  %v532_v26 = vsel %vm1462_vm0, %v526_v22, 0.0  ;;  %v533_v27 = vsel %vm523_vm2, %v527_v23, 0.0  ;;  %801 = vmatpush.bf16.msra.mxu1 %v1039_v14 }
 0x2b8   :  { %v534_v28 = vpack.c.bf16 %v521_v25, %v520_v24  ;;  %v603_v29 = vpack.c.bf16 %v533_v27, %v532_v26  ;;  %v1105_v27 = vld [vmem:[%s1514_s8] ss:$0 sm:$0xff]  ;;  %vm882_vm4 = vcmask 9216  }
 0x2b9   :  { %764 = vmatpush.bf16.msra.mxu0 %v1037_v13 }
 0x2ba   :  { %957 = vmatmul.msk.bf16.vlgmr.msrb.gmra.mxu1 %vm472_vm13, %v534_v28  ;;  %966 = vmatmul.msk.bf16.vlgmr.msrb.gmra.mxu2 %vm472_vm13, %v603_v29 }
 0x333   :  { %v569_v31 = vpop.f32.mrf.mxu0 }
 0x337   :  { %v598_v30 = vpop.f32.mrf.mxu1 }
 0x338   :  { %v599_v32 = vadd.f32 %v598_v30, %v569_v31 }
 0x33b   :  { %v571_v36 = vpop.f32.mrf.mxu0 }
 0x33d   :  { %v633_v1 = vpop.f32.mrf.mxu2 }
 0x33e   :  { %v638_v33 = vadd.f32 %v633_v1, %v599_v32 }
 0x33f   :  { %v600_v35 = vpop.f32.mrf.mxu1 }
 0x340   :  { %v644_v37 = vadd.f32 %v1104_v34, %v638_v33  ;;  %v601_v38 = vadd.f32 %v600_v35, %v571_v36 }
 0x342   :  { %v648_v41 = vmul.f32 0.01, %v644_v37  ;;  %vm646_vm1 = vcmp.ge.f32.partialorder %v644_v37, 0.0 }
 0x344   :  { %v650_v44 = vsel %vm646_vm1, %v644_v37, %v648_v41 }
 0x345   :  { %v635_v39 = vpop.f32.mrf.mxu2 }
 0x346   :  { %v639_v40 = vadd.f32 %v635_v39, %v601_v38 }
 0x348   :  { %v645_v42 = vadd.f32 %v1104_v34, %v639_v40 }
 0x34a   :  { %vm647_vm3 = vcmp.ge.f32.partialorder %v645_v42, 0.0  ;;  %v649_v43 = vmul.f32 0.01, %v645_v42 }
 0x34c   :  { %v651_v45 = vsel %vm647_vm3, %v645_v42, %v649_v43 }
 0x34d   :  { %v1088_v46 = vpack.i.bf16 %v651_v45, %v650_v44 }
 0x34f   :  { %1089 = vrot.lane.b32.xlu0 %v1088_v46, %s1285_s17 }
 0x3c1   :  { %v1090_v47 = vpop.permute.xlu0 %1089 }
 0x3c2   :  { %v1092_v48 = vunpack.i.h.bf16 %v1090_v47  ;;  %v1091_v49 = vunpack.i.l.bf16 %v1090_v47 }
 0x3c4   :  { %v654_v50 = vsel %vm367_vm11, %v1091_v49, %v650_v44  ;;  %v657_v51 = vsel %vm367_vm11, %v1092_v48, %v651_v45 }
 0x3c5   :  { %v1093_v52 = vpack.i.bf16 %v657_v51, %v654_v50 }
 0x3c7   :  { %1094 = vrot.lane.b32.xlu1 %v1093_v52, %s1285_s17 }
 0x439   :  { %v1095_v57 = vpop.permute.xlu1 %1094 }
 0x43a   :  { %v1097_v58 = vunpack.i.h.bf16 %v1095_v57  ;;  %v1096_v59 = vunpack.i.l.bf16 %v1095_v57 }
 0x43c   :  { %v662_v60 = vsel %vm367_vm11, %v1096_v59, %v650_v44  ;;  %v663_v61 = vsel %vm367_vm11, %v1097_v58, %v651_v45 }
 0x43d   :  { %v1098_v62 = vpack.i.bf16 %v663_v61, %v662_v60 }
 0x43f   :  { %1099 = vrot.lane.b32.xlu2 %v1098_v62, %s1295_s5 }
 0x499   :  { %v1100_v63 = vpop.permute.xlu2 %1099 }
 0x49a   :  { %v1102_v0 = vunpack.i.h.bf16 %v1100_v63  ;;  %v1101_v2 = vunpack.i.l.bf16 %v1100_v63 }
 0x49c   :  { %v673_v4 = vmax.f32 %v651_v45, %v1102_v0  ;;  %v672_v5 = vmax.f32 %v650_v44, %v1101_v2 }
 0x49e   :  { %v674_v6 = vpack.c.bf16 %v673_v4, %v672_v5 }
 0x4a0   :  { %983 = vmatmul.msk.bf16.vlgmr.msrb.gmra.mxu3 %vm446_vm12, %v674_v6 }
 0x523   :  { %v719_v15 = vpop.f32.mrf.mxu3 }
 0x524   :  { %724 = vst.msk [vmem:[#allocation3] sm:$0xff] %vm472_vm13, %v719_v15 }
 0x52b   :  { %v721_v16 = vpop.f32.mrf.mxu3 }
 0x52c   :  { %725 = vst.msk [vmem:[#allocation3 + $0x8] sm:$0xff] %vm472_vm13, %v721_v16 }
 0x533   :  { %v726_v17 = vld [vmem:[#allocation3] ss:$2 sm:$0xff]  ;;  %v728_v3 = vld [vmem:[#allocation3 + $0x1] ss:$2 sm:$0xff] }
 0x534   :  { %v729_v18 = vmax.f32 %v726_v17, %v728_v3 }
 0x536   :  { %730 = vst.msk [vmem:[#allocation4] sm:$0xff] %vm472_vm13, %v729_v18 }
 0x53d   :  { %v736_v19 = vld [vmem:[#allocation4] ss:$4 sm:$0x3]  ;;  %v772_v20 = vld [vmem:[#allocation4 + $0x1] ss:$4 sm:$0x3] }
 0x53e   :  { %v737_v21 = vpack.c.bf16 %v736_v19, %v736_v19  ;;  %v773_v22 = vpack.c.bf16 %v772_v20, %v772_v20  ;;  %v809_v23 = vld [vmem:[#allocation4 + $0x2] ss:$4 sm:$0x3]  ;;  %v846_v24 = vld [vmem:[#allocation4 + $0x3] ss:$4 sm:$0x3] }
 0x53f   :  { %v810_v25 = vpack.c.bf16 %v809_v23, %v809_v23  ;;  %v847_v26 = vpack.c.bf16 %v846_v24, %v846_v24 }
 0x540   :  { %992 = vmatmul.msk.bf16.vlgmr.msra.gmra.mxu0 %vm472_vm13, %v737_v21  ;;  %1001 = vmatmul.msk.bf16.vlgmr.msra.gmra.mxu1 %vm472_vm13, %v773_v22 }
 0x541   :  { %1010 = vmatmul.msk.bf16.vlgmr.msra.gmra.mxu2 %vm472_vm13, %v810_v25  ;;  %1019 = vmatmul.msk.bf16.vlgmr.msra.gmra.mxu3 %vm472_vm13, %v847_v26 }
 0x5bd   :  { %v766_v28 = vpop.f32.mrf.mxu0  ;;  %v803_v29 = vpop.f32.mrf.mxu1 }
 0x5be   :  { %v770_v30 = vadd.f32 %v1105_v27, %v766_v28 }
 0x5c0   :  { %v807_v31 = vadd.f32 %v803_v29, %v770_v30 }
 0x5c4   :  { %v840_v1 = vpop.f32.mrf.mxu2  ;;  %v877_v32 = vpop.f32.mrf.mxu3 }
 0x5c5   :  { %v844_v33 = vadd.f32 %v840_v1, %v807_v31  ;;  %v768_v34 = vpop.f32.mrf.mxu0  ;;  %v805_v35 = vpop.f32.mrf.mxu1 }
 0x5c7   :  { %v881_v36 = vadd.f32 %v877_v32, %v844_v33 }
 0x5c9   :  { %883 = vst.msk [vmem:[#allocation16] sm:$0x3] %vm882_vm4, %v881_v36 }
 0x5ca   :  { %894 = dma.vmem_to_hbm [thread:$0]  %s890_s22, 32, %s892_s24, [#allocation7]  }
 0x5cc   :  { %v842_v37 = vpop.f32.mrf.mxu2  ;;  %v879_v38 = vpop.f32.mrf.mxu3 }
 0x5cd   :  { %1282 = dma.done.wait [#allocation7], 32  }
 0x5ce   :  { %1283 = vsyncadd [#allocation7], 4294967264 }
 0x5cf   :  { %899 = vsyncpa [#allocation6], 1 }
 0x5d0   :  { %900 = vsyncpa [#allocation9], 1 }
 0x5d1   :  { %901 = vsyncpa [#allocation12], 1 }
 0x5d2   :  { %902 = vsyncpa [#allocation15], 1 }
 0x5d3   :  { %903 = vsyncpa [#allocation7], 1 }

</bundles_post_ra>
